<compile_context>
chip_gen: v6e
topology: v6e:2x2x1
jax: 0.10.0
libtpu: 0.0.40
codegen_flags: <defaults>
</compile_context>

<pallas_src>
import jax
import jax.numpy as jnp
from jax.experimental import pallas as pl
from jax.experimental.pallas import tpu as pltpu


def _mlb_kernel(sp_beta_ref, x_ref, w_ref, b_ref, o_ref):
    # Linear: (tm, H) @ (H, tn) + (1, tn), accumulate in f32 on the MXU.
    y = jnp.dot(x_ref[...], w_ref[...], preferred_element_type=jnp.float32)
    y = y + b_ref[...]
    # Swish: (y * sigmoid(y * softplus(beta))) / 1.1 — softplus precomputed.
    sp_beta = sp_beta_ref[0]
    out = (y * jax.nn.sigmoid(y * sp_beta)) * (1.0 / 1.1)
    o_ref[...] = out.astype(o_ref.dtype)


def _pick_tm(B):
    if B >= 1024:
        return 512
    if B >= 512:
        return 256
    if B >= 256:
        return 128   # >=2 grid steps on the parallel batch axis (v7x megacore)
    return B         # tiny batch: single tile / single grid step


def _pick_tn(H):
    if H <= 512:
        return H
    for cand in (512, 256, 128):
        if H % cand == 0:
            return cand
    return H


def multilayer_block(x, w, b, beta, *, tm=None, tn=None, mxu_dtype=None,
                     vmem_limit_bytes=64 << 20):
    """x: (B, H) f32; w: (H_in, H_out) (pre-transposed, y = x @ w + b);
    b: (H,) f32; beta: (1,) f32 Swish parameter.
    mxu_dtype: optional dtype (e.g. jnp.bfloat16) for the matmul operands."""
    B, H = x.shape
    out_dtype = x.dtype

    # Hoisted softplus(beta): overflow-safe, computed once, passed via SMEM.
    sp_beta = jax.nn.softplus(beta.astype(jnp.float32)).reshape(1)

    tm = _pick_tm(B) if tm is None else tm
    tn = _pick_tn(H) if tn is None else tn
    assert H % tn == 0

    # Pad batch up to a multiple of tm (sliced off at the end).
    grid_m = pl.cdiv(B, tm)
    Bp = grid_m * tm
    if Bp != B:
        x = jnp.pad(x, ((0, Bp - B), (0, 0)))
    grid_n = H // tn

    if mxu_dtype is not None:
        x = x.astype(mxu_dtype)
        w = w.astype(mxu_dtype)

    b2 = b.astype(jnp.float32).reshape(1, H)

    # Weight / bias blocks: if their block index never changes (single N tile),
    # single-buffer them so the resident weight is not duplicated in VMEM.
    if grid_n == 1:
        w_spec = pl.BlockSpec((H, tn), lambda i, j: (0, j),
                              pipeline_mode=pl.Buffered(1))
        b_spec = pl.BlockSpec((1, tn), lambda i, j: (0, j),
                              pipeline_mode=pl.Buffered(1))
    else:
        w_spec = pl.BlockSpec((H, tn), lambda i, j: (0, j))
        b_spec = pl.BlockSpec((1, tn), lambda i, j: (0, j))

    out = pl.pallas_call(
        _mlb_kernel,
        out_shape=jax.ShapeDtypeStruct((Bp, H), out_dtype),
        grid_spec=pltpu.PrefetchScalarGridSpec(
            num_scalar_prefetch=0,
            grid=(grid_m, grid_n),
            in_specs=[
                pl.BlockSpec(memory_space=pltpu.SMEM),       # softplus(beta)
                pl.BlockSpec((tm, H), lambda i, j: (i, 0)),  # x rows (full K)
                w_spec,                                      # weight (H, tn)
                b_spec,                                      # bias   (1, tn)
            ],
            out_specs=pl.BlockSpec((tm, tn), lambda i, j: (i, j)),
        ),
        compiler_params=pltpu.CompilerParams(
            dimension_semantics=("parallel", "parallel"),
            vmem_limit_bytes=vmem_limit_bytes,
        ),
    )(sp_beta, x, w, b2)

    return out[:B] if Bp != B else out


def _reference(x, w, b, beta):
    y = x @ w + b
    sp = jax.nn.softplus(beta)[0]
    return (y * jax.nn.sigmoid(y * sp)) / 1.1


if __name__ == "__main__":
    def make_inputs(key, B, H):
        kx, kw, kb = jax.random.split(key, 3)
        # Deterministic init mimicking nn.Linear: uniform(-1/sqrt(H), 1/sqrt(H)).
        bound = 1.0 / jnp.sqrt(jnp.float32(H))
        x = jax.random.normal(kx, (B, H), dtype=jnp.float32)
        w = jax.random.uniform(kw, (H, H), dtype=jnp.float32,
                               minval=-bound, maxval=bound)  # (H_in, H_out)
        b = jax.random.uniform(kb, (H,), dtype=jnp.float32,
                               minval=-bound, maxval=bound)
        return x, w, b

    beta = jnp.array([0.5], dtype=jnp.float32)  # Swish beta init

    # Small demo shape (hidden_layer_size=128, batch=16): one grid step, f32.
    x, w, b = make_inputs(jax.random.PRNGKey(0), 16, 128)
    out = multilayer_block(x, w, b, beta)
    jax.block_until_ready(out)
    ref = _reference(x, w, b, beta)
    assert out.shape == ref.shape
    assert jnp.allclose(out, ref, atol=1e-5, rtol=1e-5)

    # Same shape, bf16 MXU operands (f32 accumulate, f32 Swish): loose tolerance.
    out_bf16 = multilayer_block(x, w, b, beta, mxu_dtype=jnp.bfloat16)
    jax.block_until_ready(out_bf16)
    assert jnp.allclose(out_bf16, ref, atol=5e-2, rtol=5e-2)

    # Larger shape exercising batch padding (300 -> 384 rows, tm=128),
    # N-tiling of the weight (H=1024 -> tn=512) and a (3, 2) parallel grid.
    x2, w2, b2 = make_inputs(jax.random.PRNGKey(1), 300, 1024)
    out2 = multilayer_block(x2, w2, b2, beta)
    jax.block_until_ready(out2)
    ref2 = _reference(x2, w2, b2, beta)
    assert out2.shape == ref2.shape
    assert jnp.allclose(out2, ref2, atol=1e-3, rtol=1e-3)

    print("KERNEL_OK")
</pallas_src>

<mosaic_0001>
module attributes {stable_mosaic.version = 11 : i64} {
  func.func @_mlb_kernel(%arg0: i32, %arg1: i32, %arg2: memref<1xf32, #tpu.memory_space<smem>>, %arg3: memref<16x128xf32, #tpu.memory_space<vmem>>, %arg4: memref<128x128xf32, #tpu.memory_space<vmem>>, %arg5: memref<1x128xf32, #tpu.memory_space<vmem>>, %arg6: memref<16x128xf32, #tpu.memory_space<vmem>>) attributes {dimension_semantics = [#tpu.dimension_semantics<parallel>, #tpu.dimension_semantics<parallel>], iteration_bounds = array<i64: 1, 1>, scalar_prefetch = 0 : i64, scratch_operands = 0 : i64, tpu.core_type = #tpu.core_type<tc>, window_params = [{transform_indices = @transform_0, window_bounds = array<i64: 1>}, {transform_indices = @transform_1, window_bounds = array<i64: 16, 128>}, {pipeline_mode = #tpu.pipeline_mode<synchronous>, transform_indices = @transform_2, window_bounds = array<i64: 128, 128>}, {pipeline_mode = #tpu.pipeline_mode<synchronous>, transform_indices = @transform_3, window_bounds = array<i64: 1, 128>}, {transform_indices = @transform_4, window_bounds = array<i64: 16, 128>}]} {
    %c0 = arith.constant 0 : index
    %c0_0 = arith.constant 0 : index
    %0 = vector.load %arg3[%c0, %c0_0] : memref<16x128xf32, #tpu.memory_space<vmem>>, vector<16x128xf32>
    %c0_1 = arith.constant 0 : index
    %c0_2 = arith.constant 0 : index
    %1 = vector.load %arg4[%c0_1, %c0_2] : memref<128x128xf32, #tpu.memory_space<vmem>>, vector<128x128xf32>
    %cst = arith.constant dense<0.000000e+00> : vector<16x128xf32>
    %2 = tpu.matmul %0, %1, %cst {dimension_numbers = #tpu.dot_dimension_numbers<[1], [0], [0], [1], [0, 0, 1, 1], [], []>} : vector<16x128xf32>, vector<128x128xf32>, vector<16x128xf32> -> vector<16x128xf32>
    %c0_3 = arith.constant 0 : index
    %c0_4 = arith.constant 0 : index
    %3 = vector.load %arg5[%c0_3, %c0_4] : memref<1x128xf32, #tpu.memory_space<vmem>>, vector<1x128xf32>
    %4 = vector.broadcast %3 : vector<1x128xf32> to vector<16x128xf32>
    %5 = arith.addf %2, %4 : vector<16x128xf32>
    %c0_5 = arith.constant 0 : index
    %6 = memref.load %arg2[%c0_5] : memref<1xf32, #tpu.memory_space<smem>>
    %7 = vector.broadcast %6 : f32 to vector<16x128xf32>
    %8 = arith.mulf %5, %7 : vector<16x128xf32>
    %9 = arith.negf %8 : vector<16x128xf32>
    %10 = math.exp %9 : vector<16x128xf32>
    %cst_6 = arith.constant 1.000000e+00 : f32
    %11 = vector.broadcast %cst_6 : f32 to vector<16x128xf32>
    %12 = arith.addf %11, %10 : vector<16x128xf32>
    %13 = arith.divf %11, %12 : vector<16x128xf32>
    %14 = arith.mulf %5, %13 : vector<16x128xf32>
    %cst_7 = arith.constant 0.909090936 : f32
    %15 = vector.broadcast %cst_7 : f32 to vector<16x128xf32>
    %16 = arith.mulf %14, %15 : vector<16x128xf32>
    %c0_8 = arith.constant 0 : index
    %c0_9 = arith.constant 0 : index
    %17 = vector.load %arg6[%c0_8, %c0_9] : memref<16x128xf32, #tpu.memory_space<vmem>>, vector<16x128xf32>
    tpu.vector_store %arg6[%c0_8, %c0_9], %16 {strides = array<i32>} : memref<16x128xf32, #tpu.memory_space<vmem>>, vector<16x128xf32>,
    return
  }
  func.func @transform_0(%arg0: i32, %arg1: i32) -> i32 {
    %c0_i32 = arith.constant 0 : i32
    %c0_i32_0 = arith.constant 0 : i32
    return %c0_i32 : i32
  }
  func.func @transform_1(%arg0: i32, %arg1: i32) -> (i32, i32) {
    %c0_i32 = arith.constant 0 : i32
    %c0_i32_0 = arith.constant 0 : i32
    return %arg0, %c0_i32 : i32, i32
  }
  func.func @transform_2(%arg0: i32, %arg1: i32) -> (i32, i32) {
    %c0_i32 = arith.constant 0 : i32
    %c0_i32_0 = arith.constant 0 : i32
    return %c0_i32, %arg1 : i32, i32
  }
  func.func @transform_3(%arg0: i32, %arg1: i32) -> (i32, i32) {
    %c0_i32 = arith.constant 0 : i32
    %c0_i32_0 = arith.constant 0 : i32
    return %c0_i32, %arg1 : i32, i32
  }
  func.func @transform_4(%arg0: i32, %arg1: i32) -> (i32, i32) {
    %c0_i32 = arith.constant 0 : i32
    return %arg0, %arg1 : i32, i32
  }
}

</mosaic_0001>

<bundles_post_ra>
// kernel: tpu_custom_call.1
= control target key start
LH: loop header
LB: loop body
LE: loop exit
PB: predicated region body
PF: predicated region fallthrough
CT: control target
= control target key end

     0   :  { %10 = vsyncpa [#allocation4], 0  ;;  %s376_s0 = inlined_call_operand.<no memory space> [shape: f32[1], index: 0, kind: input, shape index: {}]   ;;  %s377_s1 = inlined_call_operand.hbm [shape: f32[16,128], index: 1, kind: input, shape index: {}]   ;;  %s378_s2 = inlined_call_operand.hbm [shape: f32[128,128], index: 2, kind: input, shape index: {}]   ;;  %s379_s3 = inlined_call_operand.vmem [shape: f32[1,128], index: 3, kind: input, shape index: {}]   ;;  %s380_s4 = inlined_call_operand.hbm [shape: f32[16,128], index: 4, kind: output, shape index: {}]  }
   0x1   :  { %11 = vsyncpa [#allocation7], 0 }
   0x2   :  { %12 = vsyncpa [#allocation5], 0  ;;  %s322_s15 = smov [#allocation3]  }
   0x3   :  { %s20_s16 = sshll.u32 %s322_s15, 4  ;;  %s21_s16 = int_to_ptr.vmem [resolvable:$true] %s20_s16 }
   0x4   :  { %s264_s17 = scalar_lea.vmem %s21_s16, 256  ;;  %p269_p1 = scmp.lt.s32.totalorder %s21_s16, %s21_s16 }
   0x5   :  { %p265_p0 = scmp.ne.s32.totalorder %s21_s16, %s264_s17  ;;  %p270_p2 = scmp.lt.s32.totalorder %s264_s17, %s264_s17 }
   0x7   :  { %p271_p3 = por %p270_p2, %p269_p1 }
   0x9   :  { %p272_p4 = pnand %p271_p3, %p265_p0 }
   0xb   :  { %275 = shalt.err (!%p272_p4)
}
   0xc   :  { %s323_s18 = smov 128   ;;  %s324_s19 = smov 8  }
   0xd   :  { %26 = dma.hbm_to_vmem [thread:$0]  %s377_s1, 256, %s21_s16, [#allocation4], %s323_s18, %s323_s18, %s324_s19  }
   0xe   :  { %s325_s22 = smov [#allocation6]  }
   0xf   :  { %s32_s23 = sshll.u32 %s325_s22, 4  ;;  %s33_s23 = int_to_ptr.vmem [resolvable:$true] %s32_s23 }
  0x10   :  { %s284_s24 = scalar_lea.vmem %s33_s23, 2048  ;;  %p289_p6 = scmp.lt.s32.totalorder %s33_s23, %s33_s23 }
  0x11   :  { %p285_p5 = scmp.ne.s32.totalorder %s33_s23, %s284_s24  ;;  %p290_p7 = scmp.lt.s32.totalorder %s284_s24, %s284_s24 }
  0x13   :  { %p291_p8 = por %p290_p7, %p289_p6 }
  0x15   :  { %p292_p9 = pnand %p291_p8, %p285_p5 }
  0x17   :  { %295 = shalt.err (!%p292_p9)
}
  0x18   :  { %38 = dma.hbm_to_vmem [thread:$0]  %s378_s2, 2048, %s33_s23, [#allocation7], %s323_s18, %s323_s18, %s324_s19  }
  0x19   :  { %316 = dma.done.wait [#allocation4], 256  }
  0x1a   :  { %317 = vsyncadd [#allocation4], 4294967040 }
  0x1b   :  { %318 = dma.done.wait [#allocation7], 2048  }
  0x1c   :  { %319 = vsyncadd [#allocation7], 4294965248  ;;  %v64_v0 = vld [vmem:[#allocation6 + $0x78] sm:$0xff]  ;;  %v63_v1 = vld [vmem:[#allocation6 + $0x70] sm:$0xff]  ;;  %v148_v20 = vstv %s376_s0 }
  0x1d   :  { %208 = vmatprep.subr.mxu0 %v64_v0  ;;  %v62_v2 = vld [vmem:[#allocation6 + $0x68] sm:$0xff]  ;;  %v61_v3 = vld [vmem:[#allocation6 + $0x60] sm:$0xff]  ;;  %v47_v4 = vld [vmem:[#allocation3] sm:$0xff] }
  0x1e   :  { %209 = vmatpush3.msra.mxu0 %v64_v0  ;;  %v60_v5 = vld [vmem:[#allocation6 + $0x58] sm:$0xff]  ;;  %240 = vmatprep.mubr.f32.mxu0 %v47_v4  ;;  %v59_v6 = vld [vmem:[#allocation6 + $0x50] sm:$0xff]  ;;  %v58_v7 = vld [vmem:[#allocation6 + $0x48] sm:$0xff] }
  0x1f   :  { %210 = vmatprep.subr.mxu0 %v63_v1  ;;  %v57_v8 = vld [vmem:[#allocation6 + $0x40] sm:$0xff]  ;;  %v56_v9 = vld [vmem:[#allocation6 + $0x38] sm:$0xff]  ;;  %v55_v10 = vld [vmem:[#allocation6 + $0x30] sm:$0xff] }
  0x20   :  { %211 = vmatpush3.msra.mxu0 %v63_v1  ;;  %v54_v11 = vld [vmem:[#allocation6 + $0x28] sm:$0xff]  ;;  %v53_v12 = vld [vmem:[#allocation6 + $0x20] sm:$0xff]  ;;  %v52_v13 = vld [vmem:[#allocation6 + $0x18] sm:$0xff] }
  0x21   :  { %212 = vmatprep.subr.mxu0 %v62_v2  ;;  %v51_v14 = vld [vmem:[#allocation6 + $0x10] sm:$0xff]  ;;  %v50_v15 = vld [vmem:[#allocation6 + $0x8] sm:$0xff]  ;;  %v49_v16 = vld [vmem:[#allocation6] sm:$0xff] }
  0x22   :  { %213 = vmatpush3.msra.mxu0 %v62_v2  ;;  %v48_v17 = vld [vmem:[#allocation3 + $0x8] sm:$0xff]  ;;  %v187_v18 = vld [vmem:[%s379_s3] ss:$0 sm:$0xff]  ;;  %s326_s3 = smov [#allocation8]  }
  0x23   :  { %214 = vmatprep.subr.mxu0 %v61_v3  ;;  %s174_s0 = sshll.u32 %s326_s3, 4  ;;  %s175_s0 = int_to_ptr.vmem [resolvable:$true] %s174_s0 }
  0x24   :  { %215 = vmatpush3.msra.mxu0 %v61_v3  ;;  %s296_s29 = scalar_lea.vmem %s175_s0, 256  ;;  %p301_p11 = scmp.lt.s32.totalorder %s175_s0, %s175_s0 }
  0x25   :  { %216 = vmatprep.subr.mxu0 %v60_v5  ;;  %p297_p10 = scmp.ne.s32.totalorder %s175_s0, %s296_s29  ;;  %p302_p12 = scmp.lt.s32.totalorder %s296_s29, %s296_s29 }
  0x26   :  { %217 = vmatpush3.msra.mxu0 %v60_v5 }
  0x27   :  { %218 = vmatprep.subr.mxu0 %v59_v6  ;;  %p303_p13 = por %p302_p12, %p301_p11 }
  0x28   :  { %219 = vmatpush3.msra.mxu0 %v59_v6 }
  0x29   :  { %220 = vmatprep.subr.mxu0 %v58_v7  ;;  %p304_p0 = pnand %p303_p13, %p297_p10 }
  0x2a   :  { %221 = vmatpush3.msra.mxu0 %v58_v7 }
  0x2b   :  { %222 = vmatprep.subr.mxu0 %v57_v8 }
  0x2c   :  { %223 = vmatpush3.msra.mxu0 %v57_v8 }
  0x2d   :  { %224 = vmatprep.subr.mxu0 %v56_v9 }
  0x2e   :  { %225 = vmatpush3.msra.mxu0 %v56_v9 }
  0x2f   :  { %226 = vmatprep.subr.mxu0 %v55_v10 }
  0x30   :  { %227 = vmatpush3.msra.mxu0 %v55_v10 }
  0x31   :  { %228 = vmatprep.subr.mxu0 %v54_v11 }
  0x32   :  { %229 = vmatpush3.msra.mxu0 %v54_v11 }
  0x33   :  { %230 = vmatprep.subr.mxu0 %v53_v12 }
  0x34   :  { %231 = vmatpush3.msra.mxu0 %v53_v12 }
  0x35   :  { %232 = vmatprep.subr.mxu0 %v52_v13 }
  0x36   :  { %233 = vmatpush3.msra.mxu0 %v52_v13 }
  0x37   :  { %234 = vmatprep.subr.mxu0 %v51_v14 }
  0x38   :  { %235 = vmatpush3.msra.mxu0 %v51_v14 }
  0x39   :  { %236 = vmatprep.subr.mxu0 %v50_v15 }
  0x3a   :  { %237 = vmatpush3.msra.mxu0 %v50_v15 }
  0x3b   :  { %238 = vmatprep.subr.mxu0 %v49_v16 }
  0x3c   :  { %239 = vmatpush3.msra.mxu0 %v49_v16 }
  0x3d   :  { %241 = vmatmul.mubr.f32.vlgmr.msra.gmra.mxu0 %v48_v17 }
  0xfd   :  { %v242_v19 = vpop.f32.mrf.mxu0 }
  0xfe   :  { %v144_v21 = vadd.f32 %v242_v19, %v187_v18 }
  0xff   :  { %v138_v22 = vpop.f32.mrf.mxu0 }
 0x100   :  { %v150_v23 = vmul.f32 %v148_v20, %v144_v21  ;;  %v139_v24 = vadd.f32 %v187_v18, %v138_v22 }
 0x102   :  { %v189_v25 = vmul.f32 -1.442695, %v150_v23  ;;  %v149_v26 = vmul.f32 %v148_v20, %v139_v24 }
 0x104   :  { %248 = vpow2.f32 %v189_v25  ;;  %v188_v27 = vmul.f32 -1.442695, %v149_v26 }
 0x106   :  { %250 = vpow2.f32 %v188_v27 }
 0x111   :  { %v249_v28 = vpop.eup %248 }
 0x112   :  { %v158_v29 = vadd.f32 1.0, %v249_v28 }
 0x113   :  { %v251_v30 = vpop.eup %250 }
 0x114   :  { %252 = vrcp.f32 %v158_v29  ;;  %v157_v31 = vadd.f32 1.0, %v251_v30 }
 0x116   :  { %254 = vrcp.f32 %v157_v31 }
 0x121   :  { %v253_v32 = vpop.eup %252 }
 0x122   :  { %v164_v33 = vmul.f32 %v253_v32, %v144_v21 }
 0x123   :  { %v255_v34 = vpop.eup %254 }
 0x124   :  { %v166_v35 = vmul.f32 0.90909094, %v164_v33  ;;  %v163_v36 = vmul.f32 %v255_v34, %v139_v24 }
 0x126   :  { %168 = vst [vmem:[#allocation8 + $0x8] sm:$0xff] %v166_v35  ;;  %v165_v37 = vmul.f32 0.90909094, %v163_v36 }
 0x128   :  { %167 = vst [vmem:[#allocation8] sm:$0xff] %v165_v37 }
 0x129   :  { %307 = shalt.err (!%p304_p0)
}
 0x12a   :  { %180 = dma.vmem_to_hbm [thread:$0]  %s175_s0, 256, %s380_s4, [#allocation5], %s323_s18, %s323_s18, %s324_s19  }
 0x12b   :  { %320 = dma.done.wait [#allocation5], 256  }
 0x12c   :  { %321 = vsyncadd [#allocation5], 4294967040 }
 0x12d   :  { %184 = vsyncpa [#allocation4], 1 }
 0x12e   :  { %185 = vsyncpa [#allocation7], 1 }
 0x12f   :  { %186 = vsyncpa [#allocation5], 1 }

</bundles_post_ra>
